<compile_context>
chip_gen: v7x
topology: tpu7x:2x2x1
jax: 0.10.0
libtpu: 0.0.40
codegen_flags: <defaults>
</compile_context>

<pallas_src>
import functools

import jax
import jax.numpy as jnp
from jax.experimental import pallas as pl
from jax.experimental.pallas import tpu as pltpu

_LANE_W = 1024   # lane-dense slab width (multiple of 128)
_TILE_R = 512    # rows per grid step -> f32 output tile = 2 MiB


def _convert_kernel(x_ref, o_ref, *, scale):
    x = x_ref[...]
    if scale is None:
        # float -> float: plain cast, no f32 round-trip
        o_ref[...] = x.astype(o_ref.dtype)
    else:
        # int -> float: cast then rescale by 1 / max(input dtype)
        o_ref[...] = (x.astype(jnp.float32) * scale).astype(o_ref.dtype)


def convert_image_dtype(image: jax.Array, dtype=jnp.float32) -> jax.Array:
    """Pallas implementation of torchvision's convert_image_dtype for
    (integer|float) input -> float target dtype."""
    if not jnp.issubdtype(dtype, jnp.floating):
        # TODO(synk): float->int / int->int target paths (scale to int max) not wired up.
        raise NotImplementedError("only float target dtypes implemented")

    in_dtype = image.dtype
    if jnp.issubdtype(in_dtype, jnp.floating):
        scale = None  # plain cast
    else:
        scale = 1.0 / float(jnp.iinfo(in_dtype).max)

    orig_shape = image.shape
    total = 1
    for d in orig_shape:
        total *= d

    # ---- choose a lane-dense, tile-aligned slab [rows, W] -------------------
    W = _LANE_W
    rows = pl.cdiv(total, W)
    if rows <= _TILE_R:
        tile_r = rows                      # single block; full-dim exemption
    else:
        tile_r = _TILE_R
        rows = pl.cdiv(rows, tile_r) * tile_r  # pad rows to a tile multiple
    padded_total = rows * W

    flat = image.reshape(-1)
    if padded_total != total:
        flat = jnp.pad(flat, (0, padded_total - total))
    x2d = flat.reshape(rows, W)

    grid = (rows // tile_r,)
    kernel = functools.partial(_convert_kernel, scale=scale)

    in_bytes = jnp.dtype(in_dtype).itemsize
    out_bytes = jnp.dtype(dtype).itemsize
    cost = pl.CostEstimate(
        flops=padded_total,
        transcendentals=0,
        bytes_accessed=padded_total * (in_bytes + out_bytes),
    )

    out2d = pl.pallas_call(
        kernel,
        out_shape=jax.ShapeDtypeStruct((rows, W), dtype),
        grid=grid,
        in_specs=[pl.BlockSpec((tile_r, W), lambda i: (i, 0))],
        out_specs=pl.BlockSpec((tile_r, W), lambda i: (i, 0)),
        compiler_params=pltpu.CompilerParams(
            dimension_semantics=("parallel",),
        ),
        cost_estimate=cost,
    )(x2d)

    out_flat = out2d.reshape(-1)
    if padded_total != total:
        out_flat = out_flat[:total]
    return out_flat.reshape(orig_shape)


class ConvertImageDtype:
    """Mirrors the PyTorch module: forward(image, target) -> (image, target)."""

    def __init__(self, dtype=jnp.float32):
        self.dtype = dtype

    def __call__(self, image, target=None):
        return convert_image_dtype(image, self.dtype), target


if __name__ == "__main__":
    key = jax.random.PRNGKey(0)

    # small NCHW uint8 image, deterministic
    x_u8 = jax.random.randint(
        key, shape=(2, 4, 16, 16), minval=0, maxval=256, dtype=jnp.int32
    ).astype(jnp.uint8)

    # int -> float path
    module = ConvertImageDtype(jnp.float32)
    out, tgt = module(x_u8, target=None)
    out = jax.block_until_ready(out)
    ref = x_u8.astype(jnp.float32) / 255.0
    assert out.shape == x_u8.shape and out.dtype == jnp.float32
    assert bool(jnp.allclose(out, ref, atol=1e-6, rtol=1e-6))
    assert tgt is None

    # float -> float (plain cast) path
    x_f32 = ref
    module_bf16 = ConvertImageDtype(jnp.bfloat16)
    out_bf16, _ = module_bf16(x_f32, target=None)
    out_bf16 = jax.block_until_ready(out_bf16)
    ref_bf16 = x_f32.astype(jnp.bfloat16)
    assert out_bf16.dtype == jnp.bfloat16 and out_bf16.shape == x_f32.shape
    assert bool(
        jnp.allclose(
            out_bf16.astype(jnp.float32), ref_bf16.astype(jnp.float32)
        )
    )

    print("KERNEL_OK")
</pallas_src>

<mosaic_0001>
module attributes {stable_mosaic.version = 11 : i64} {
  func.func @_convert_kernel(%arg0: i32, %arg1: memref<2x1024xi8, #tpu.memory_space<vmem>>, %arg2: memref<2x1024xf32, #tpu.memory_space<vmem>>) attributes {dimension_semantics = [#tpu.dimension_semantics<parallel>], iteration_bounds = array<i64: 1>, scalar_prefetch = 0 : i64, scratch_operands = 0 : i64, tpu.core_type = #tpu.core_type<tc>, window_params = [{transform_indices = @transform_0, window_bounds = array<i64: 2, 1024>}, {transform_indices = @transform_1, window_bounds = array<i64: 2, 1024>}]} {
    %c0 = arith.constant 0 : index
    %c0_0 = arith.constant 0 : index
    %0 = vector.load %arg1[%c0, %c0_0] : memref<2x1024xi8, #tpu.memory_space<vmem>>, vector<2x1024xi8>
    %1 = arith.uitofp %0 : vector<2x1024xi8> to vector<2x1024xf32>
    %cst = arith.constant 0.00392156886 : f32
    %2 = vector.broadcast %cst : f32 to vector<2x1024xf32>
    %3 = arith.mulf %1, %2 : vector<2x1024xf32>
    %c0_1 = arith.constant 0 : index
    %c0_2 = arith.constant 0 : index
    %4 = vector.load %arg2[%c0_1, %c0_2] : memref<2x1024xf32, #tpu.memory_space<vmem>>, vector<2x1024xf32>
    tpu.vector_store %arg2[%c0_1, %c0_2], %3 {strides = array<i32>} : memref<2x1024xf32, #tpu.memory_space<vmem>>, vector<2x1024xf32>,
    return
  }
  func.func @transform_0(%arg0: i32) -> (i32, i32) {
    %c0_i32 = arith.constant 0 : i32
    %c0_i32_0 = arith.constant 0 : i32
    return %arg0, %c0_i32 : i32, i32
  }
  func.func @transform_1(%arg0: i32) -> (i32, i32) {
    %c0_i32 = arith.constant 0 : i32
    %c0_i32_0 = arith.constant 0 : i32
    return %arg0, %c0_i32 : i32, i32
  }
}

</mosaic_0001>

<bundles_post_ra>
// kernel: tpu_custom_call.1
= control target key start
LH: loop header
LB: loop body
LE: loop exit
PB: predicated region body
PF: predicated region fallthrough
CT: control target
= control target key end

     0   :  { %6 = vsyncpa [#allocation3], 0  ;;  %s179_s0 = inlined_call_operand.hbm [shape: u8[2,1024], index: 0, kind: input, shape index: {}]   ;;  %s180_s1 = inlined_call_operand.hbm [shape: f32[2,1024], index: 1, kind: output, shape index: {}]  }
   0x1   :  { %7 = vsyncpa [#allocation4], 0  ;;  %s142_s6 = smov [#allocation2]   ;;  %s94_s10 = scalar_lea.hbm %s179_s0, 128 }
   0x2   :  { %s14_s7 = sshll.u32 %s142_s6, 4  ;;  %p95_p0 = scmp.ne.s32.totalorder %s179_s0, %s94_s10  ;;  %s15_s7 = int_to_ptr.vmem [resolvable:$true] %s14_s7 }
   0x3   :  { %p98_p1 = scmp.lt.u32.totalorder %s94_s10, %s179_s0 }
   0x5   :  { %p100_p2 = pnand %p98_p1, %p95_p0 }
   0x7   :  { %103 = shalt.err (!%p100_p2)
}
   0x8   :  { %s104_s15 = scalar_lea.vmem %s15_s7, 128  ;;  %p109_p4 = scmp.lt.s32.totalorder %s15_s7, %s15_s7 }
   0x9   :  { %p105_p3 = scmp.ne.s32.totalorder %s15_s7, %s104_s15  ;;  %p110_p5 = scmp.lt.s32.totalorder %s104_s15, %s104_s15 }
   0xb   :  { %p111_p6 = por %p110_p5, %p109_p4 }
   0xd   :  { %p112_p7 = pnand %p111_p6, %p105_p3 }
   0xf   :  { %115 = shalt.err (!%p112_p7)
}
  0x10   :  { %17 = dma.hbm_to_vmem [thread:$0]  %s179_s0, 128, %s15_s7, [#allocation3]  }
  0x11   :  { %138 = dma.done.wait [#allocation3], 128  }
  0x12   :  { %139 = vsyncadd [#allocation3], 4294967168  ;;  %v143_v0 = vmov 1983009808   ;;  %v45_v2 = vlaneseq  ;;  %v21_v3 = vld [vmem:[#allocation2] sm:$0xff]  ;;  %s144_s0 = smov [#allocation5]  }
  0x13   :  { %v43_v1 = vunpack.c.l.s4 %v143_v0  ;;  %v22_v6 = vunpack.c.0.s8 %v21_v3  ;;  %v23_v7 = vunpack.c.1.s8 %v21_v3  ;;  %v24_v8 = vunpack.c.2.s8 %v21_v3  ;;  %s82_s18 = sshll.u32 %s144_s0, 4  ;;  %s83_s18 = int_to_ptr.vmem [resolvable:$true] %s82_s18 }
  0x14   :  { %v46_v5 = vshrl.u32 %v45_v2, 7  ;;  %v25_v9 = vunpack.c.3.s8 %v21_v3  ;;  %s116_s19 = scalar_lea.vmem %s83_s18, 256  ;;  %p121_p9 = scmp.lt.s32.totalorder %s83_s18, %s83_s18 }
  0x15   :  { %v44_v4 = vunpack.c.0.s8 %v43_v1  ;;  %v26_v10 = vand.u32 255, %v22_v6  ;;  %v27_v11 = vand.u32 255, %v23_v7  ;;  %v28_v12 = vand.u32 255, %v24_v8  ;;  %p117_p8 = scmp.ne.s32.totalorder %s83_s18, %s116_s19  ;;  %p122_p10 = scmp.lt.s32.totalorder %s116_s19, %s116_s19 }
  0x16   :  { %v29_v13 = vand.u32 255, %v25_v9 }
  0x17   :  { %v47_v14 = vsub.s32 %v44_v4, %v46_v5  ;;  %v30_v15 = vcvt.s32.f32 %v26_v10  ;;  %v31_v16 = vcvt.s32.f32 %v27_v11  ;;  %v32_v17 = vcvt.s32.f32 %v28_v12  ;;  %p123_p11 = por %p122_p10, %p121_p9 }
  0x18   :  { %v33_v18 = vcvt.s32.f32 %v29_v13 }
  0x19   :  { %v34_v19 = vmul.f32 0.003921569, %v30_v15  ;;  %v35_v20 = vmul.f32 0.003921569, %v31_v16  ;;  %v36_v21 = vmul.f32 0.003921569, %v32_v17  ;;  %p124_p12 = pnand %p123_p11, %p117_p8 }
  0x1a   :  { %v37_v22 = vmul.f32 0.003921569, %v33_v18 }
  0x1b   :  { %v48_v23 = vrot.slane %v34_v19, %v47_v14  ;;  %v55_v24 = vrot.slane %v35_v20, %v47_v14  ;;  %v63_v25 = vrot.slane %v36_v21, %v47_v14 }
  0x1c   :  { %v70_v26 = vrot.slane %v37_v22, %v47_v14 }
  0x1d   :  { %v56_v27 = vcombine.low %v48_v23, %v55_v24 }
  0x1e   :  { %v71_v28 = vcombine.low %v63_v25, %v70_v26 }
  0x1f   :  { %74 = vst [vmem:[#allocation5] sm:$0xff] %v56_v27 }
  0x20   :  { %75 = vst [vmem:[#allocation5 + $0x8] sm:$0xff] %v71_v28 }
  0x21   :  { %127 = shalt.err (!%p124_p12)
}
  0x22   :  { %s128_s22 = scalar_lea.hbm %s180_s1, 256 }
  0x23   :  { %p129_p13 = scmp.ne.s32.totalorder %s180_s1, %s128_s22  ;;  %p132_p0 = scmp.lt.u32.totalorder %s128_s22, %s180_s1 }
  0x25   :  { %p134_p1 = pnand %p132_p0, %p129_p13 }
  0x27   :  { %137 = shalt.err (!%p134_p1)
}
  0x28   :  { %85 = dma.vmem_to_hbm [thread:$0]  %s83_s18, 256, %s180_s1, [#allocation4]  }
  0x29   :  { %140 = dma.done.wait [#allocation4], 256  }
  0x2a   :  { %141 = vsyncadd [#allocation4], 4294967040 }
  0x2b   :  { %89 = vsyncpa [#allocation3], 1 }
  0x2c   :  { %90 = vsyncpa [#allocation4], 1 }

</bundles_post_ra>
